<compile_context>
chip_gen: v5e
topology: v5e:2x2
jax: 0.10.0
libtpu: 0.0.40
codegen_flags: <defaults>
</compile_context>

<pallas_src>
import jax
import jax.numpy as jnp
from jax.experimental import pallas as pl
from jax.experimental.pallas import tpu as pltpu


def _projection_kernel(x_ref, m_ref, w_ref, b_ref, o_ref):
    # x_ref: (TM, C_in)  m_ref: (TM, 1)  w_ref: (C_in, C_out)  b_ref: (1, C_out)
    stats = jnp.dot(x_ref[...], w_ref[...], preferred_element_type=jnp.float32)
    stats = (stats + b_ref[...]) * m_ref[...]        # bias + mask fused in-kernel
    o_ref[...] = stats.astype(o_ref.dtype)


def _round_up(v, m):
    return (v + m - 1) // m * m


@jax.jit
def projection_forward(x, x_mask, weight, bias):
    """Pallas TPU implementation of Projection.forward.

    x:      [B, hidden_channels, T]   (NCL, like PyTorch)
    x_mask: [B, 1, T]
    weight: [2*out_channels, hidden_channels]   (Conv1d k=1 weight, squeezed)
    bias:   [2*out_channels]
    returns (m_p, logs_p), each [B, out_channels, T]  (same layout as PyTorch)
    """
    B, C_in, T = x.shape
    C_out = weight.shape[0]
    out_channels = C_out // 2

    # Channels-last + flatten (B, T) onto sublanes: one lane-dense matmul.
    xt = jnp.transpose(x, (0, 2, 1)).reshape(B * T, C_in).astype(jnp.float32)
    mt = jnp.transpose(x_mask, (0, 2, 1)).reshape(B * T, 1).astype(jnp.float32)
    w = jnp.transpose(weight, (1, 0)).astype(jnp.float32)       # (C_in, C_out)
    b = bias.reshape(1, C_out).astype(jnp.float32)

    M = B * T
    # Row tiling: a single block when small; 256-row tiles (parallel grid ->
    # both TensorCores on v7x) when large.  Pad rows so blocks divide evenly;
    # padded rows have mask 0 and are sliced off below.
    TM = M if M <= 256 else 256
    TM = max(_round_up(TM, 8), 8)
    M_pad = _round_up(M, TM)
    if M_pad != M:
        xt = jnp.pad(xt, ((0, M_pad - M), (0, 0)))
        mt = jnp.pad(mt, ((0, M_pad - M), (0, 0)))

    stats = pl.pallas_call(
        _projection_kernel,
        out_shape=jax.ShapeDtypeStruct((M_pad, C_out), jnp.float32),
        grid=(M_pad // TM,),
        in_specs=[pl.BlockSpec((TM, C_in), lambda i: (i, 0)),
                  pl.BlockSpec((TM, 1), lambda i: (i, 0)),
                  pl.BlockSpec((C_in, C_out), lambda i: (0, 0)),
                  pl.BlockSpec((1, C_out), lambda i: (0, 0))],
        out_specs=pl.BlockSpec((TM, C_out), lambda i: (i, 0)),
        compiler_params=pltpu.CompilerParams(
            dimension_semantics=("parallel",)),
    )(xt, mt, w, b)

    stats = stats[:M].reshape(B, T, C_out)
    stats = jnp.transpose(stats, (0, 2, 1))          # back to NCL: [B, 2*out, T]
    m_p = stats[:, :out_channels, :]
    logs_p = stats[:, out_channels:, :]
    return m_p, logs_p


if __name__ == "__main__":
    # Module hyper-params (small; 2*out_channels = 128 keeps the store lane-dense).
    hidden_channels = 32
    out_channels = 64
    B, T = 2, 16

    key = jax.random.PRNGKey(0)
    k_x, k_w, k_b = jax.random.split(key, 3)

    x = jax.random.normal(k_x, (B, hidden_channels, T), jnp.float32)
    lengths = jnp.array([16, 12], jnp.int32)
    x_mask = (jnp.arange(T)[None, :] < lengths[:, None]).astype(
        jnp.float32).reshape(B, 1, T)

    # Conv1d(hidden, 2*out, 1) weights (kernel dim squeezed) + bias.
    s = 1.0 / (hidden_channels ** 0.5)
    weight = jax.random.normal(k_w, (2 * out_channels, hidden_channels),
                               jnp.float32) * s
    bias = jax.random.normal(k_b, (2 * out_channels,), jnp.float32) * s

    m_p, logs_p = projection_forward(x, x_mask, weight, bias)
    m_p, logs_p = jax.block_until_ready((m_p, logs_p))

    # Pure-JAX reference of the PyTorch forward.
    stats_ref = jnp.einsum("oc,bct->bot", weight, x) + bias[None, :, None]
    stats_ref = stats_ref * x_mask
    m_ref = stats_ref[:, :out_channels, :]
    logs_ref = stats_ref[:, out_channels:, :]

    assert m_p.shape == (B, out_channels, T), m_p.shape
    assert logs_p.shape == (B, out_channels, T), logs_p.shape
    assert bool(jnp.all(jnp.isfinite(m_p))) and bool(jnp.all(jnp.isfinite(logs_p)))
    assert bool(jnp.allclose(m_p, m_ref, atol=1e-5, rtol=1e-5))
    assert bool(jnp.allclose(logs_p, logs_ref, atol=1e-5, rtol=1e-5))
    # masked frames must be zero (stats * x_mask)
    assert bool(jnp.all(m_p[1, :, 12:] == 0.0))
    assert bool(jnp.all(logs_p[1, :, 12:] == 0.0))
    print("KERNEL_OK")
</pallas_src>

<mosaic_0001>
module attributes {stable_mosaic.version = 11 : i64} {
  func.func @_projection_kernel(%arg0: i32, %arg1: memref<32x32xf32, #tpu.memory_space<vmem>>, %arg2: memref<32x1xf32, #tpu.memory_space<vmem>>, %arg3: memref<32x128xf32, #tpu.memory_space<vmem>>, %arg4: memref<1x128xf32, #tpu.memory_space<vmem>>, %arg5: memref<32x128xf32, #tpu.memory_space<vmem>>) attributes {dimension_semantics = [#tpu.dimension_semantics<parallel>], iteration_bounds = array<i64: 1>, scalar_prefetch = 0 : i64, scratch_operands = 0 : i64, tpu.core_type = #tpu.core_type<tc>, window_params = [{transform_indices = @transform_0, window_bounds = array<i64: 32, 32>}, {transform_indices = @transform_1, window_bounds = array<i64: 32, 1>}, {pipeline_mode = #tpu.pipeline_mode<synchronous>, transform_indices = @transform_2, window_bounds = array<i64: 32, 128>}, {pipeline_mode = #tpu.pipeline_mode<synchronous>, transform_indices = @transform_3, window_bounds = array<i64: 1, 128>}, {transform_indices = @transform_4, window_bounds = array<i64: 32, 128>}]} {
    %c0 = arith.constant 0 : index
    %c0_0 = arith.constant 0 : index
    %0 = vector.load %arg1[%c0, %c0_0] : memref<32x32xf32, #tpu.memory_space<vmem>>, vector<32x32xf32>
    %c0_1 = arith.constant 0 : index
    %c0_2 = arith.constant 0 : index
    %1 = vector.load %arg3[%c0_1, %c0_2] : memref<32x128xf32, #tpu.memory_space<vmem>>, vector<32x128xf32>
    %cst = arith.constant dense<0.000000e+00> : vector<32x128xf32>
    %2 = tpu.matmul %0, %1, %cst {dimension_numbers = #tpu.dot_dimension_numbers<[1], [0], [0], [1], [0, 0, 1, 1], [], []>} : vector<32x32xf32>, vector<32x128xf32>, vector<32x128xf32> -> vector<32x128xf32>
    %c0_3 = arith.constant 0 : index
    %c0_4 = arith.constant 0 : index
    %3 = vector.load %arg4[%c0_3, %c0_4] : memref<1x128xf32, #tpu.memory_space<vmem>>, vector<1x128xf32>
    %4 = vector.broadcast %3 : vector<1x128xf32> to vector<32x128xf32>
    %5 = arith.addf %2, %4 : vector<32x128xf32>
    %c0_5 = arith.constant 0 : index
    %c0_6 = arith.constant 0 : index
    %6 = vector.load %arg2[%c0_5, %c0_6] : memref<32x1xf32, #tpu.memory_space<vmem>>, vector<32x1xf32>
    %7 = vector.broadcast %6 : vector<32x1xf32> to vector<32x128xf32>
    %8 = arith.mulf %5, %7 : vector<32x128xf32>
    %c0_7 = arith.constant 0 : index
    %c0_8 = arith.constant 0 : index
    %9 = vector.load %arg5[%c0_7, %c0_8] : memref<32x128xf32, #tpu.memory_space<vmem>>, vector<32x128xf32>
    tpu.vector_store %arg5[%c0_7, %c0_8], %8 {strides = array<i32>} : memref<32x128xf32, #tpu.memory_space<vmem>>, vector<32x128xf32>,
    return
  }
  func.func @transform_0(%arg0: i32) -> (i32, i32) {
    %c0_i32 = arith.constant 0 : i32
    %c0_i32_0 = arith.constant 0 : i32
    return %arg0, %c0_i32 : i32, i32
  }
  func.func @transform_1(%arg0: i32) -> (i32, i32) {
    %c0_i32 = arith.constant 0 : i32
    %c0_i32_0 = arith.constant 0 : i32
    return %arg0, %c0_i32 : i32, i32
  }
  func.func @transform_2(%arg0: i32) -> (i32, i32) {
    %c0_i32 = arith.constant 0 : i32
    %c0_i32_0 = arith.constant 0 : i32
    %c0_i32_1 = arith.constant 0 : i32
    return %c0_i32, %c0_i32_0 : i32, i32
  }
  func.func @transform_3(%arg0: i32) -> (i32, i32) {
    %c0_i32 = arith.constant 0 : i32
    %c0_i32_0 = arith.constant 0 : i32
    %c0_i32_1 = arith.constant 0 : i32
    return %c0_i32, %c0_i32_0 : i32, i32
  }
  func.func @transform_4(%arg0: i32) -> (i32, i32) {
    %c0_i32 = arith.constant 0 : i32
    %c0_i32_0 = arith.constant 0 : i32
    return %arg0, %c0_i32 : i32, i32
  }
}

</mosaic_0001>

<bundles_post_ra>
// kernel: projection_forward.1
= control target key start
LH: loop header
LB: loop body
LE: loop exit
PB: predicated region body
PF: predicated region fallthrough
CT: control target
= control target key end

     0   :  { %9 = vsyncpa [#allocation3], 0  ;;  %s173_s18 = smov [#allocation2]   ;;  %s174_s20 = smov 128   ;;  %s244_s0 = inlined_call_operand.vmem [shape: f32[32,32], index: 0, kind: input, shape index: {}]   ;;  %s245_s1 = inlined_call_operand.vmem [shape: f32[32,1], index: 1, kind: input, shape index: {}]   ;;  %s246_s2 = inlined_call_operand.hbm [shape: f32[32,128], index: 2, kind: input, shape index: {}]   ;;  %s247_s3 = inlined_call_operand.vmem [shape: f32[1,128], index: 3, kind: input, shape index: {}]   ;;  %s248_s4 = inlined_call_operand.vmem [shape: f32[32,128], index: 4, kind: output, shape index: {}]  }
   0x1   :  { %s18_s17 = sshll.u32 %s246_s2, 4  ;;  %s20_s19 = sshll.u32 %s173_s18, 4  ;;  %s19_s17 = int_to_ptr.hbm [resolvable:$true] %s18_s17  ;;  %s21_s19 = int_to_ptr.vmem [resolvable:$true] %s20_s19 }
   0x2   :  { %s175_s21 = smov 8  }
   0x3   :  { %26 = dma.hbm_to_vmem [thread:$0]  %s19_s17, 512, %s21_s19, [#allocation3], %s174_s20, %s174_s20, %s175_s21  }
   0x4   :  { %171 = dma.done.wait [#allocation3], 512  }
   0x5   :  { %172 = vsyncadd [#allocation3], 4294966784  ;;  %v176_v0 = vmov 0   ;;  %v40_v1 = vld [vmem:[#allocation2 + $0x18] sm:$0xff]  ;;  %v39_v2 = vld [vmem:[#allocation2 + $0x10] sm:$0xff]  ;;  %vm45_vm0 = vcmask 261120  }
   0x6   :  { %145 = vset.pattern.permute.xlu1 %v176_v0  ;;  %144 = vset.pattern.permute.xlu0 %v176_v0  ;;  %v38_v3 = vld [vmem:[#allocation2 + $0x8] sm:$0xff]  ;;  %v37_v4 = vld [vmem:[#allocation2] sm:$0xff]  ;;  %v35_v7 = vld [vmem:[%s244_s0 + $0x10] sm:$0xff] }
   0x7   :  { %70 = vmatpush.msra.mxu0 %v40_v1  ;;  %128 = vmatpush.msra.mxu1 %v40_v1  ;;  %v33_v5 = vld [vmem:[%s244_s0] sm:$0xff]  ;;  %v34_v6 = vld [vmem:[%s244_s0 + $0x8] sm:$0xff]  ;;  %v36_v8 = vld [vmem:[%s244_s0 + $0x18] sm:$0xff] }
   0x8   :  { %129 = vmatpush.msra.mxu2 %v40_v1  ;;  %130 = vmatpush.msra.mxu3 %v40_v1  ;;  %v89_v9 = vld [vmem:[%s245_s1 + $0x10] sm:$0xff]  ;;  %v87_v10 = vld [vmem:[%s245_s1] sm:$0xff]  ;;  %v90_v11 = vld [vmem:[%s245_s1 + $0x18] sm:$0xff] }
   0x9   :  { %71 = vmatpush.msra.mxu0 %v39_v2  ;;  %131 = vmatpush.msra.mxu1 %v39_v2  ;;  %v88_v12 = vld [vmem:[%s245_s1 + $0x8] sm:$0xff]  ;;  %v146_v14 = vld [vmem:[%s247_s3] ss:$0 sm:$0xff] }
   0xa   :  { %132 = vmatpush.msra.mxu2 %v39_v2  ;;  %133 = vmatpush.msra.mxu3 %v39_v2 }
   0xb   :  { %72 = vmatpush.msra.mxu0 %v38_v3  ;;  %134 = vmatpush.msra.mxu1 %v38_v3 }
   0xc   :  { %135 = vmatpush.msra.mxu2 %v38_v3  ;;  %136 = vmatpush.msra.mxu3 %v38_v3 }
   0xd   :  { %73 = vmatpush.msra.mxu0 %v37_v4  ;;  %137 = vmatpush.msra.mxu1 %v37_v4 }
   0xe   :  { %138 = vmatpush.msra.mxu2 %v37_v4  ;;  %139 = vmatpush.msra.mxu3 %v37_v4 }
   0xf   :  { %124 = vmatmul.msk.f32.vlgmr.msra.gmra.mxu0 %vm45_vm0, %v33_v5  ;;  %125 = vmatmul.msk.f32.vlgmr.msra.gmra.mxu1 %vm45_vm0, %v34_v6 }
  0x10   :  { %126 = vmatmul.msk.f32.vlgmr.msra.gmra.mxu2 %vm45_vm0, %v35_v7  ;;  %127 = vmatmul.msk.f32.vlgmr.msra.gmra.mxu3 %vm45_vm0, %v36_v8 }
  0x11   :  { %103 = vperm.xlu1 %145, %v89_v9   ;;  %93 = vperm.xlu0 %144, %v87_v10  }
  0x19   :  { %108 = vperm.xlu1 %145, %v90_v11   ;;  %98 = vperm.xlu0 %144, %v88_v12  }
  0x83   :  { %v94_v13 = vpop.permute.xlu0 %93  ;;  %v104_v15 = vpop.permute.xlu1 %103 }
  0x8b   :  { %v99_v20 = vpop.permute.xlu0 %98  ;;  %v109_v27 = vpop.permute.xlu1 %108 }
  0x8c   :  { %v75_v16 = vpop.f32.mrf.mxu0  ;;  %v78_v17 = vpop.f32.mrf.mxu1 }
  0x8d   :  { %v76_v18 = vadd.f32 %v146_v14, %v75_v16  ;;  %v79_v19 = vadd.f32 %v146_v14, %v78_v17 }
  0x8f   :  { %v111_v21 = vmul.f32 %v94_v13, %v76_v18  ;;  %v112_v22 = vmul.f32 %v99_v20, %v79_v19 }
  0x91   :  { %115 = vst [vmem:[%s248_s4] sm:$0xff] %v111_v21 }
  0x92   :  { %116 = vst [vmem:[%s248_s4 + $0x8] sm:$0xff] %v112_v22 }
  0x93   :  { %v81_v23 = vpop.f32.mrf.mxu2  ;;  %v84_v24 = vpop.f32.mrf.mxu3 }
  0x94   :  { %v82_v25 = vadd.f32 %v146_v14, %v81_v23  ;;  %v85_v26 = vadd.f32 %v146_v14, %v84_v24 }
  0x96   :  { %v113_v28 = vmul.f32 %v104_v15, %v82_v25  ;;  %v114_v29 = vmul.f32 %v109_v27, %v85_v26 }
  0x98   :  { %117 = vst [vmem:[%s248_s4 + $0x10] sm:$0xff] %v113_v28 }
  0x99   :  { %118 = vst [vmem:[%s248_s4 + $0x18] sm:$0xff] %v114_v29 }
  0x9a   :  { %123 = vsyncpa [#allocation3], 1 }

</bundles_post_ra>
